<compile_context>
chip_gen: v7x
topology: tpu7x:2x2x1
jax: 0.10.0
libtpu: 0.0.40
codegen_flags: <defaults>
</compile_context>

<pallas_src>
import functools
import math

import jax
import jax.numpy as jnp
import numpy as np
from jax import lax
from jax.experimental import pallas as pl
from jax.experimental.pallas import tpu as pltpu

_LANES = 128
_SUBLANES = 8


def _cdiv(a, b):
    return -(-a // b)


def _round_up(a, b):
    return _cdiv(a, b) * b


def _class_period_rows(num_class):
    """Rows after which the lane->class pattern of the flat stream repeats,
    rounded up to whole 8-sublane vregs (lcm with 8)."""
    p_rows = num_class // math.gcd(num_class, _LANES)
    return (p_rows * _SUBLANES) // math.gcd(p_rows, _SUBLANES)


def _guess_num_tensorcores():
    """Best-effort TensorCore count for the leading 'parallel' split.
    Defaults to 1 (correct and optimal for single-core v5e/v6e)."""
    try:
        info = pltpu.get_tpu_info()
        for name in ("num_cores", "core_count", "num_tensorcores", "tensorcore_count"):
            v = getattr(info, name, None)
            if isinstance(v, int) and v > 0:
                return v
    except Exception:
        pass
    try:
        kind = jax.devices()[0].device_kind.lower()
        if "v7" in kind:
            return 2
    except Exception:
        pass
    return 1


def _dice_partial_kernel(x_ref, y_ref, num_ref, den_ref, *,
                         p, tile_rows, q_rows, tiles_per_split, total_rows,
                         needs_mask):
    """Accumulates per-(row mod q_rows, lane) partial sums of x*y and x^p + y^p."""
    i = pl.program_id(1)                      # reduction step within this split

    @pl.when(i == 0)
    def _():
        num_ref[...] = jnp.zeros_like(num_ref)
        den_ref[...] = jnp.zeros_like(den_ref)

    n_blk = tile_rows // q_rows

    def _accumulate(x, y):
        num_tile = x * y
        if p == 1:
            den_tile = x + y
        elif p == 2:
            den_tile = x * x + y * y          # explicit muls, no pow expansion
        else:
            den_tile = lax.integer_pow(x, p) + lax.integer_pow(y, p)
        # Keep the accumulator vreg-shaped (q_rows, 128): reduce only the leading
        # n_blk axis each step (pure VALU adds over whole vregs); the tiny
        # cross-lane / per-class combine happens once, in the wrapper.
        num_ref[...] += jnp.sum(num_tile.reshape(n_blk, q_rows, _LANES),
                                axis=0, keepdims=True)
        den_ref[...] += jnp.sum(den_tile.reshape(n_blk, q_rows, _LANES),
                                axis=0, keepdims=True)

    x = x_ref[...].astype(jnp.float32)        # (tile_rows, 128)
    y = y_ref[...].astype(jnp.float32)

    if not needs_mask:
        _accumulate(x, y)
    else:
        # Gate the ragged-tile masking: only tiles that actually overhang the end
        # of the valid data pay the iota + compares + selects.
        s = pl.program_id(0)
        row_start = (s * tiles_per_split + i) * tile_rows
        valid = total_rows - row_start        # may be <= 0 (fully masked tile)

        @pl.when(valid >= tile_rows)
        def _():
            _accumulate(x, y)

        @pl.when(valid < tile_rows)
        def _():
            row_ids = lax.broadcasted_iota(jnp.int32, (tile_rows, _LANES), 0)
            keep = row_ids < valid
            _accumulate(jnp.where(keep, x, 0.0), jnp.where(keep, y, 0.0))


def _combine(num_pc, den_pc, weights, num_class, ignore_index, lambda_clf, smooth):
    """Per-class dice -> weighted sum (matches the PyTorch module exactly)."""
    dice_loss = 1.0 - (num_pc + smooth) / (den_pc + smooth)     # (num_class,)
    if weights is not None:
        dice_loss = dice_loss * (1.0 - weights)
    if ignore_index is not None:
        # Skip (not just zero-weight) the ignored class, like the PyTorch loop.
        dice_loss = jnp.where(jnp.arange(num_class) == ignore_index, 0.0, dice_loss)
    return (lambda_clf * jnp.sum(dice_loss) / num_class).astype(jnp.float32)


def weighted_dice_loss(outputs, targets, weights=None, *, ignore_index=None,
                       lambda_clf=1.0, smooth=0.0, p=1, num_splits=None,
                       block_bytes=2 << 20):
    """JAX/Pallas equivalent of WeightedDiceLoss.forward (PyTorch module)."""
    assert outputs.shape == targets.shape, "predict & target shapes must match"
    p = int(p)
    assert p >= 1, "zero masking of the flattened stream is only exact for p >= 1"
    num_class = int(outputs.shape[-1])

    w = None
    if weights is not None:
        w = jnp.asarray(weights, jnp.float32).reshape(-1)
        assert w.shape[0] == num_class, (
            "Expect weights shape [{}], got [{}]".format(num_class, w.shape[0]))

    # Keep f32/bf16 inputs in native dtype (cast per tile inside the kernel).
    def _as_supported(a):
        return a if a.dtype in (jnp.float32, jnp.bfloat16) else a.astype(jnp.float32)

    x = _as_supported(outputs)
    y = _as_supported(targets)

    q_rows = _class_period_rows(num_class)
    total = int(np.prod(x.shape))

    # Tiny-input (or pathological class-period) fallback: the whole reduction is a
    # handful of vregs -- a kernel launch + grid setup is pure overhead there.
    if total < q_rows * _LANES or q_rows > 2048:
        xf = x.reshape(-1, num_class).astype(jnp.float32)
        yf = y.reshape(-1, num_class).astype(jnp.float32)
        num_pc = jnp.sum(xf * yf, axis=0)
        den_pc = jnp.sum(lax.integer_pow(xf, p) + lax.integer_pow(yf, p), axis=0)
        return _combine(num_pc, den_pc, w, num_class, ignore_index, lambda_clf, smooth)

    x = x.reshape(-1)
    y = y.reshape(-1)

    # Lane alignment: the flat stream must be a whole number of 128-lane rows.
    # Usually a no-op; otherwise pad <=127 zeros (exact for p >= 1).
    pad = (-total) % _LANES
    if pad:
        # TODO(synk): the <=127-element tail forces a full-stream copy here; the
        # alternative (tail in plain JAX + prefix slice into pallas_call) also
        # materializes a copy, so accept it for this rare case.
        x = jnp.pad(x, (0, pad))
        y = jnp.pad(y, (0, pad))
        total += pad

    total_rows = total // _LANES
    x2 = x.reshape(total_rows, _LANES)       # pure view: class = flat_idx % C
    y2 = y.reshape(total_rows, _LANES)

    # ~2 MiB per input block: 2 inputs x 2 buffers x 2 MiB = 8 MiB double-buffered
    # VMEM, inside v5e's 16 MiB scoped default and v6e/v7x defaults; large enough
    # to amortize the ~0.35 us per-step overhead on v7x's faster HBM.
    itemsize = max(x2.dtype.itemsize, y2.dtype.itemsize)
    target_rows = max(q_rows,
                      (int(block_bytes) // (_LANES * itemsize)) // q_rows * q_rows)

    # Tiles are whole multiples of q_rows and never exceed the array; balance the
    # tile size so the last (ragged, masked) tile wastes as little as possible.
    max_tile = (total_rows // q_rows) * q_rows
    ntiles = max(1, _cdiv(total_rows, target_rows))
    tile_rows = min(max_tile, _round_up(_cdiv(total_rows, ntiles), q_rows))
    total_tiles = _cdiv(total_rows, tile_rows)
    tile_rows = min(tile_rows, _round_up(_cdiv(total_rows, total_tiles), q_rows))
    total_tiles = _cdiv(total_rows, tile_rows)

    # Leading "parallel" split: 1 on single-TC chips (v5e/v6e), >1 only when a
    # multi-TensorCore chip is detected (v7x) -- avoids phantom re-DMA steps and a
    # second accumulator init/writeback where they cannot help.
    if num_splits is None:
        num_splits = _guess_num_tensorcores()
    num_splits = max(1, min(int(num_splits), total_tiles))
    tiles_per_split = _cdiv(total_tiles, num_splits)
    grid_tiles = num_splits * tiles_per_split
    needs_clamp = grid_tiles > total_tiles
    needs_mask = needs_clamp or (total_tiles * tile_rows != total_rows)
    last_tile = total_tiles - 1

    def in_index_map(s, i):
        t = s * tiles_per_split + i
        if needs_clamp:
            t = jnp.minimum(t, last_tile)    # overshoot steps reload the last
        return (t, 0)                        # block; they are fully masked.

    kernel = functools.partial(
        _dice_partial_kernel, p=p, tile_rows=tile_rows, q_rows=q_rows,
        tiles_per_split=tiles_per_split, total_rows=total_rows,
        needs_mask=needs_mask)

    acc_shape = jax.ShapeDtypeStruct((num_splits, q_rows, _LANES), jnp.float32)
    acc_spec = pl.BlockSpec((1, q_rows, _LANES), lambda s, i: (s, 0, 0))

    elems = total_rows * _LANES
    cost = pl.CostEstimate(flops=int((4 + p) * elems), transcendentals=0,
                           bytes_accessed=int(2 * elems * itemsize))

    num_parts, den_parts = pl.pallas_call(
        kernel,
        out_shape=(acc_shape, acc_shape),
        grid_spec=pltpu.PrefetchScalarGridSpec(
            num_scalar_prefetch=0,
            grid=(num_splits, tiles_per_split),
            in_specs=[
                pl.BlockSpec((tile_rows, _LANES), in_index_map),
                pl.BlockSpec((tile_rows, _LANES), in_index_map),
            ],
            out_specs=(acc_spec, acc_spec),
        ),
        compiler_params=pltpu.CompilerParams(
            dimension_semantics=("parallel", "arbitrary")),
        cost_estimate=cost,
    )(x2, y2)

    # Flat accumulator position j (= q*128 + lane) holds class (j % num_class), and
    # q_rows*128 is a multiple of num_class by construction -> an exact, tiny
    # reshape(-1, C).sum(0) de-interleaves the per-class sums.
    num_pc = num_parts.sum(axis=0).reshape(-1, num_class).sum(axis=0)
    den_pc = den_parts.sum(axis=0).reshape(-1, num_class).sum(axis=0)
    return _combine(num_pc, den_pc, w, num_class, ignore_index, lambda_clf, smooth)


def _reference(outputs, targets, weights=None, ignore_index=None, lambda_clf=1.0,
               smooth=0.0, p=1):
    """Pure-JAX mirror of the PyTorch WeightedDiceLoss module."""
    num_class = outputs.shape[-1]
    x = outputs.reshape(-1, num_class).astype(jnp.float32)
    y = targets.reshape(-1, num_class).astype(jnp.float32)
    total = 0.0
    for i in range(num_class):
        if i == ignore_index:
            continue
        num = jnp.sum(x[:, i] * y[:, i]) + smooth
        den = jnp.sum(x[:, i] ** p + y[:, i] ** p) + smooth
        term = 1.0 - num / den
        if weights is not None:
            term = term * (1.0 - jnp.asarray(weights, jnp.float32)[i])
        total = total + term
    return lambda_clf * (total / num_class)


if __name__ == "__main__":
    key = jax.random.PRNGKey(0)
    k1, k2, k3, k4 = jax.random.split(key, 4)

    # --- Test 1: small, module-consistent shapes (channels-last, C | 128) ----
    B, H, W, C = 2, 16, 16, 4
    outputs = jax.random.uniform(k1, (B, H, W, C), dtype=jnp.float32)
    labels = jax.random.randint(k2, (B, H, W), 0, C)
    targets = jax.nn.one_hot(labels, C, dtype=jnp.float32)
    weights = jnp.array([0.1, 0.2, 0.3, 0.4], dtype=jnp.float32)

    loss = jax.block_until_ready(
        weighted_dice_loss(outputs, targets, weights,
                           ignore_index=None, lambda_clf=1.0, smooth=0.0, p=1))
    ref = jax.block_until_ready(_reference(outputs, targets, weights))
    np.testing.assert_allclose(np.asarray(loss), np.asarray(ref),
                               rtol=1e-5, atol=1e-6)

    # --- Test 2: multi-tile grid + ragged-tile masking + awkward C (=6, no class
    #             padding needed) + ignore_index / smooth / p=2 ---------------
    B2, H2, W2, C2 = 16, 100, 50, 6
    out2 = jax.random.uniform(k3, (B2, H2, W2, C2), dtype=jnp.float32)
    lbl2 = jax.random.randint(k4, (B2, H2, W2), 0, C2)
    tgt2 = jax.nn.one_hot(lbl2, C2, dtype=jnp.float32)
    w2 = jnp.linspace(0.05, 0.55, C2, dtype=jnp.float32)

    loss2 = jax.block_until_ready(
        weighted_dice_loss(out2, tgt2, w2, ignore_index=1,
                           lambda_clf=0.5, smooth=1.0, p=2))
    ref2 = jax.block_until_ready(
        _reference(out2, tgt2, w2, ignore_index=1, lambda_clf=0.5,
                   smooth=1.0, p=2))
    np.testing.assert_allclose(np.asarray(loss2), np.asarray(ref2),
                               rtol=1e-4, atol=1e-6)

    print("KERNEL_OK")
</pallas_src>

<mosaic_0001>
module attributes {stable_mosaic.version = 11 : i64} {
  func.func @_dice_partial_kernel(%arg0: i32, %arg1: i32, %arg2: memref<16x128xf32, #tpu.memory_space<vmem>>, %arg3: memref<16x128xf32, #tpu.memory_space<vmem>>, %arg4: memref<1x8x128xf32, #tpu.memory_space<vmem>>, %arg5: memref<1x8x128xf32, #tpu.memory_space<vmem>>) attributes {dimension_semantics = [#tpu.dimension_semantics<parallel>, #tpu.dimension_semantics<arbitrary>], iteration_bounds = array<i64: 1, 1>, scalar_prefetch = 0 : i64, scratch_operands = 0 : i64, tpu.core_type = #tpu.core_type<tc>, window_params = [{transform_indices = @transform_0, window_bounds = array<i64: 16, 128>}, {transform_indices = @transform_1, window_bounds = array<i64: 16, 128>}, {transform_indices = @transform_2, window_bounds = array<i64: 1, 8, 128>}, {transform_indices = @transform_3, window_bounds = array<i64: 1, 8, 128>}]} {
    %c0_i32 = arith.constant 0 : i32
    %0 = arith.cmpi eq, %arg1, %c0_i32 : i32
    %1 = arith.extui %0 : i1 to i32
    %c0_i32_0 = arith.constant 0 : i32
    %2 = arith.cmpi ne, %1, %c0_i32_0 : i32
    scf.if %2 {
      %cst_17 = arith.constant 0.000000e+00 : f32
      %19 = vector.broadcast %cst_17 : f32 to vector<1x8x128xf32>
      %c0_18 = arith.constant 0 : index
      %c0_19 = arith.constant 0 : index
      %c0_20 = arith.constant 0 : index
      %20 = vector.load %arg4[%c0_18, %c0_19, %c0_20] : memref<1x8x128xf32, #tpu.memory_space<vmem>>, vector<1x8x128xf32>
      tpu.vector_store %arg4[%c0_18, %c0_19, %c0_20], %19 {strides = array<i32>} : memref<1x8x128xf32, #tpu.memory_space<vmem>>, vector<1x8x128xf32>,
      %cst_21 = arith.constant 0.000000e+00 : f32
      %21 = vector.broadcast %cst_21 : f32 to vector<1x8x128xf32>
      %c0_22 = arith.constant 0 : index
      %c0_23 = arith.constant 0 : index
      %c0_24 = arith.constant 0 : index
      %22 = vector.load %arg5[%c0_22, %c0_23, %c0_24] : memref<1x8x128xf32, #tpu.memory_space<vmem>>, vector<1x8x128xf32>
      tpu.vector_store %arg5[%c0_22, %c0_23, %c0_24], %21 {strides = array<i32>} : memref<1x8x128xf32, #tpu.memory_space<vmem>>, vector<1x8x128xf32>,
    } else {
    }
    %c0 = arith.constant 0 : index
    %c0_1 = arith.constant 0 : index
    %3 = vector.load %arg2[%c0, %c0_1] : memref<16x128xf32, #tpu.memory_space<vmem>>, vector<16x128xf32>
    %c0_2 = arith.constant 0 : index
    %c0_3 = arith.constant 0 : index
    %4 = vector.load %arg3[%c0_2, %c0_3] : memref<16x128xf32, #tpu.memory_space<vmem>>, vector<16x128xf32>
    %5 = arith.mulf %3, %4 : vector<16x128xf32>
    %6 = arith.addf %3, %4 : vector<16x128xf32>
    %c0_4 = arith.constant 0 : index
    %c0_5 = arith.constant 0 : index
    %c0_6 = arith.constant 0 : index
    %7 = vector.load %arg4[%c0_4, %c0_5, %c0_6] : memref<1x8x128xf32, #tpu.memory_space<vmem>>, vector<1x8x128xf32>
    %8 = vector.shape_cast %5 : vector<16x128xf32> to vector<2x8x128xf32>
    %cst = arith.constant dense<0.000000e+00> : vector<8x128xf32>
    %9 = vector.multi_reduction <add>, %8, %cst [0] : vector<2x8x128xf32> to vector<8x128xf32>
    %10 = vector.shape_cast %9 : vector<8x128xf32> to vector<1x8x128xf32>
    %11 = arith.addf %7, %10 : vector<1x8x128xf32>
    %c0_7 = arith.constant 0 : index
    %c0_8 = arith.constant 0 : index
    %c0_9 = arith.constant 0 : index
    %12 = vector.load %arg4[%c0_7, %c0_8, %c0_9] : memref<1x8x128xf32, #tpu.memory_space<vmem>>, vector<1x8x128xf32>
    tpu.vector_store %arg4[%c0_7, %c0_8, %c0_9], %11 {strides = array<i32>} : memref<1x8x128xf32, #tpu.memory_space<vmem>>, vector<1x8x128xf32>,
    %c0_10 = arith.constant 0 : index
    %c0_11 = arith.constant 0 : index
    %c0_12 = arith.constant 0 : index
    %13 = vector.load %arg5[%c0_10, %c0_11, %c0_12] : memref<1x8x128xf32, #tpu.memory_space<vmem>>, vector<1x8x128xf32>
    %14 = vector.shape_cast %6 : vector<16x128xf32> to vector<2x8x128xf32>
    %cst_13 = arith.constant dense<0.000000e+00> : vector<8x128xf32>
    %15 = vector.multi_reduction <add>, %14, %cst_13 [0] : vector<2x8x128xf32> to vector<8x128xf32>
    %16 = vector.shape_cast %15 : vector<8x128xf32> to vector<1x8x128xf32>
    %17 = arith.addf %13, %16 : vector<1x8x128xf32>
    %c0_14 = arith.constant 0 : index
    %c0_15 = arith.constant 0 : index
    %c0_16 = arith.constant 0 : index
    %18 = vector.load %arg5[%c0_14, %c0_15, %c0_16] : memref<1x8x128xf32, #tpu.memory_space<vmem>>, vector<1x8x128xf32>
    tpu.vector_store %arg5[%c0_14, %c0_15, %c0_16], %17 {strides = array<i32>} : memref<1x8x128xf32, #tpu.memory_space<vmem>>, vector<1x8x128xf32>,
    return
  }
  func.func @transform_0(%arg0: i32, %arg1: i32) -> (i32, i32) {
    %c1_i32 = arith.constant 1 : i32
    %0 = arith.muli %arg0, %c1_i32 : i32
    %1 = arith.addi %0, %arg1 : i32
    %c0_i32 = arith.constant 0 : i32
    %c0_i32_0 = arith.constant 0 : i32
    return %1, %c0_i32 : i32, i32
  }
  func.func @transform_1(%arg0: i32, %arg1: i32) -> (i32, i32) {
    %c1_i32 = arith.constant 1 : i32
    %0 = arith.muli %arg0, %c1_i32 : i32
    %1 = arith.addi %0, %arg1 : i32
    %c0_i32 = arith.constant 0 : i32
    %c0_i32_0 = arith.constant 0 : i32
    return %1, %c0_i32 : i32, i32
  }
  func.func @transform_2(%arg0: i32, %arg1: i32) -> (i32, i32, i32) {
    %c0_i32 = arith.constant 0 : i32
    %c0_i32_0 = arith.constant 0 : i32
    %c0_i32_1 = arith.constant 0 : i32
    return %arg0, %c0_i32, %c0_i32_0 : i32, i32, i32
  }
  func.func @transform_3(%arg0: i32, %arg1: i32) -> (i32, i32, i32) {
    %c0_i32 = arith.constant 0 : i32
    %c0_i32_0 = arith.constant 0 : i32
    %c0_i32_1 = arith.constant 0 : i32
    return %arg0, %c0_i32, %c0_i32_0 : i32, i32, i32
  }
}

</mosaic_0001>

<bundles_post_ra>
// kernel: tpu_custom_call.1
= control target key start
LH: loop header
LB: loop body
LE: loop exit
PB: predicated region body
PF: predicated region fallthrough
CT: control target
= control target key end

     0   :  { %9 = vsyncpa [#allocation3], 0  ;;  %s284_s0 = inlined_call_operand.hbm [shape: f32[16,128], index: 0, kind: input, shape index: {}]   ;;  %s285_s1 = inlined_call_operand.hbm [shape: f32[16,128], index: 1, kind: input, shape index: {}]   ;;  %s286_s2 = inlined_call_operand.hbm [shape: f32[1,8,128], index: 2, kind: output, shape index: {0}]   ;;  %s287_s3 = inlined_call_operand.hbm [shape: f32[1,8,128], index: 3, kind: output, shape index: {1}]  }
   0x1   :  { %10 = vsyncpa [#allocation6], 0 }
   0x2   :  { %11 = vsyncpa [#allocation4], 0 }
   0x3   :  { %12 = vsyncpa [#allocation9], 0  ;;  %s210_s12 = smov [#allocation2]   ;;  %s114_s16 = scalar_lea.hbm %s284_s0, 256 }
   0x4   :  { %s22_s13 = sshll.u32 %s210_s12, 4  ;;  %p115_p0 = scmp.ne.s32.totalorder %s284_s0, %s114_s16  ;;  %s23_s13 = int_to_ptr.vmem [resolvable:$true] %s22_s13 }
   0x5   :  { %p118_p1 = scmp.lt.u32.totalorder %s114_s16, %s284_s0 }
   0x7   :  { %p120_p2 = pnand %p118_p1, %p115_p0 }
   0x9   :  { %123 = shalt.err (!%p120_p2)
}
   0xa   :  { %s124_s21 = scalar_lea.vmem %s23_s13, 256  ;;  %p129_p4 = scmp.lt.s32.totalorder %s23_s13, %s23_s13 }
   0xb   :  { %p125_p3 = scmp.ne.s32.totalorder %s23_s13, %s124_s21  ;;  %p130_p5 = scmp.lt.s32.totalorder %s124_s21, %s124_s21 }
   0xd   :  { %p131_p6 = por %p130_p5, %p129_p4 }
   0xf   :  { %p132_p7 = pnand %p131_p6, %p125_p3 }
  0x11   :  { %135 = shalt.err (!%p132_p7)
}
  0x12   :  { %s211_s22 = smov 128   ;;  %s212_s23 = smov 8  }
  0x13   :  { %28 = dma.hbm_to_vmem [thread:$0]  %s284_s0, 256, %s23_s13, [#allocation3], %s211_s22, %s211_s22, %s212_s23  }
  0x14   :  { %s213_s26 = smov [#allocation5]   ;;  %s136_s30 = scalar_lea.hbm %s285_s1, 256 }
  0x15   :  { %s38_s27 = sshll.u32 %s213_s26, 4  ;;  %p137_p8 = scmp.ne.s32.totalorder %s285_s1, %s136_s30  ;;  %s39_s27 = int_to_ptr.vmem [resolvable:$true] %s38_s27 }
  0x16   :  { %p140_p9 = scmp.lt.u32.totalorder %s136_s30, %s285_s1 }
  0x18   :  { %p142_p10 = pnand %p140_p9, %p137_p8 }
  0x1a   :  { %145 = shalt.err (!%p142_p10)
}
  0x1b   :  { %s146_s8 = scalar_lea.vmem %s39_s27, 256  ;;  %p151_p12 = scmp.lt.s32.totalorder %s39_s27, %s39_s27 }
  0x1c   :  { %p147_p11 = scmp.ne.s32.totalorder %s39_s27, %s146_s8  ;;  %p152_p13 = scmp.lt.s32.totalorder %s146_s8, %s146_s8 }
  0x1e   :  { %p153_p0 = por %p152_p13, %p151_p12 }
  0x20   :  { %p154_p1 = pnand %p153_p0, %p147_p11 }
  0x22   :  { %157 = shalt.err (!%p154_p1)
}
  0x23   :  { %44 = dma.hbm_to_vmem [thread:$0]  %s285_s1, 256, %s39_s27, [#allocation6], %s211_s22, %s211_s22, %s212_s23  }
  0x24   :  { %202 = dma.done.wait [#allocation3], 256  }
  0x25   :  { %203 = vsyncadd [#allocation3], 4294967040 }
  0x26   :  { %204 = dma.done.wait [#allocation6], 256  }
  0x27   :  { %205 = vsyncadd [#allocation6], 4294967040  ;;  %v61_v0 = vld [vmem:[#allocation2] sm:$0xff]  ;;  %v62_v1 = vld [vmem:[#allocation2 + $0x8] sm:$0xff]  ;;  %s214_s10 = smov [#allocation7]   ;;  %s215_s12 = smov [#allocation8]  }
  0x28   :  { %v63_v2 = vld [vmem:[#allocation5] sm:$0xff]  ;;  %v64_v3 = vld [vmem:[#allocation5 + $0x8] sm:$0xff]  ;;  %s83_s11 = sshll.u32 %s214_s10, 4  ;;  %s93_s13 = sshll.u32 %s215_s12, 4  ;;  %s84_s11 = int_to_ptr.vmem [resolvable:$true] %s83_s11  ;;  %s94_s13 = int_to_ptr.vmem [resolvable:$true] %s93_s13 }
  0x29   :  { %v65_v4 = vmul.f32 %v63_v2, %v61_v0  ;;  %v67_v5 = vadd.f32 %v63_v2, %v61_v0  ;;  %v66_v6 = vmul.f32 %v64_v3, %v62_v1  ;;  %v68_v7 = vadd.f32 %v64_v3, %v62_v1  ;;  %s158_s1 = scalar_lea.vmem %s84_s11, 128  ;;  %p163_p3 = scmp.lt.s32.totalorder %s84_s11, %s84_s11 }
  0x2a   :  { %p159_p2 = scmp.ne.s32.totalorder %s84_s11, %s158_s1  ;;  %p164_p4 = scmp.lt.s32.totalorder %s158_s1, %s158_s1 }
  0x2b   :  { %v70_v8 = vadd.f32 %v66_v6, %v65_v4  ;;  %v74_v9 = vadd.f32 %v68_v7, %v67_v5 }
  0x2c   :  { %p165_p5 = por %p164_p4, %p163_p3 }
  0x2d   :  { %72 = vst [vmem:[#allocation7] sm:$0xff] %v70_v8  ;;  %76 = vst [vmem:[#allocation8] sm:$0xff] %v74_v9 }
  0x2e   :  { %p166_p6 = pnand %p165_p5, %p159_p2 }
  0x30   :  { %169 = shalt.err (!%p166_p6)
}
  0x31   :  { %s170_s16 = scalar_lea.hbm %s286_s2, 128 }
  0x32   :  { %p171_p7 = scmp.ne.s32.totalorder %s286_s2, %s170_s16  ;;  %p174_p8 = scmp.lt.u32.totalorder %s170_s16, %s286_s2 }
  0x34   :  { %p176_p9 = pnand %p174_p8, %p171_p7 }
  0x36   :  { %179 = shalt.err (!%p176_p9)
}
  0x37   :  { %86 = dma.vmem_to_hbm [thread:$0]  %s84_s11, 128, %s286_s2, [#allocation4]  }
  0x38   :  { %s180_s23 = scalar_lea.vmem %s94_s13, 128  ;;  %p185_p11 = scmp.lt.s32.totalorder %s94_s13, %s94_s13 }
  0x39   :  { %p181_p10 = scmp.ne.s32.totalorder %s94_s13, %s180_s23  ;;  %p186_p12 = scmp.lt.s32.totalorder %s180_s23, %s180_s23 }
  0x3b   :  { %p187_p13 = por %p186_p12, %p185_p11 }
  0x3d   :  { %p188_p0 = pnand %p187_p13, %p181_p10 }
  0x3f   :  { %191 = shalt.err (!%p188_p0)
}
  0x40   :  { %s192_s26 = scalar_lea.hbm %s287_s3, 128 }
  0x41   :  { %p193_p1 = scmp.ne.s32.totalorder %s287_s3, %s192_s26  ;;  %p196_p2 = scmp.lt.u32.totalorder %s192_s26, %s287_s3 }
  0x43   :  { %p198_p3 = pnand %p196_p2, %p193_p1 }
  0x45   :  { %201 = shalt.err (!%p198_p3)
}
  0x46   :  { %96 = dma.vmem_to_hbm [thread:$0]  %s94_s13, 128, %s287_s3, [#allocation9]  }
  0x47   :  { %206 = dma.done.wait [#allocation4], 128  }
  0x48   :  { %207 = vsyncadd [#allocation4], 4294967168 }
  0x49   :  { %208 = dma.done.wait [#allocation9], 128  }
  0x4a   :  { %209 = vsyncadd [#allocation9], 4294967168 }
  0x4b   :  { %103 = vsyncpa [#allocation3], 1 }
  0x4c   :  { %104 = vsyncpa [#allocation6], 1 }
  0x4d   :  { %105 = vsyncpa [#allocation4], 1 }
  0x4e   :  { %106 = vsyncpa [#allocation9], 1 }

</bundles_post_ra>
